<compile_context>
chip_gen: v5e
topology: v5e:2x2
jax: 0.10.0
libtpu: 0.0.40
codegen_flags: <defaults>
</compile_context>

<pallas_src>
import functools

import jax
import jax.numpy as jnp
from jax.experimental import pallas as pl
from jax.experimental.pallas import tpu as pltpu


def _beta_mode_kernel(alpha_ref, beta_ref, out_ref, *, half_bin, min_rating,
                      max_rating):
    a = alpha_ref[...]
    b = beta_ref[...]

    # (alpha - 1) / (alpha + beta - 2) * max_rating; only selected when both
    # alpha > 1 and beta > 1, so the denominator is > 0 on selected lanes.
    # Division by zero on unselected lanes is harmless (masked by the select).
    default_mode = (a - 1.0) / (a + b - 2.0) * max_rating

    both_gt1 = (a > 1.0) & (b > 1.0)
    # Exact collapse of the remaining nested-where branches (see header).
    fallback = jnp.where(a > b, max_rating,
                         jnp.where(a < b, 0.0, 0.5 * max_rating))
    mode = jnp.where(both_gt1, default_mode, fallback)

    out = jnp.clip(mode + half_bin, min_rating, max_rating)
    out_ref[...] = out.astype(out_ref.dtype)


def beta_mode(inputs0, inputs1, *, bin_size=1.0, min_rating=1.0,
              max_rating=5.0):
    """Pallas implementation of BetaMode.forward for inputs=(inputs0, inputs1)."""
    dtype = jnp.promote_types(inputs0.dtype, inputs1.dtype)
    alpha = inputs0[:, 0].astype(dtype)
    beta = inputs1[:, 0].astype(dtype)

    out_shape = alpha.shape
    n = alpha.size
    if n == 0:
        return jnp.zeros(out_shape, dtype=dtype)

    a_flat = jnp.reshape(alpha, (-1,))
    b_flat = jnp.reshape(beta, (-1,))

    # Lane-dense slab: prefer wide rows (bigger contiguous DMA rows) when the
    # flat length allows it; otherwise fall back to 128 lanes.
    lane_w = 128
    for cand in (4096, 2048, 1024, 512, 256):
        if n % cand == 0:
            lane_w = cand
            break

    # Minimal tail padding (< 128 elements) only when n is not lane-aligned.
    pad = (-n) % lane_w
    if pad:
        filler = jnp.full((pad,), 2.0, dtype=dtype)  # harmless: (2-1)/(2+2-2)
        a_flat = jnp.concatenate([a_flat, filler])
        b_flat = jnp.concatenate([b_flat, filler])

    rows = (n + pad) // lane_w
    a2d = jnp.reshape(a_flat, (rows, lane_w))
    b2d = jnp.reshape(b_flat, (rows, lane_w))

    # Dtype-aware sublane granularity (8 for f32, 16 for bf16, 32 for int8).
    itemsize = jnp.dtype(dtype).itemsize
    sub = max(8, 32 // max(itemsize, 1))

    # ~512 KiB per input block: big enough to amortize per-grid-step overhead,
    # small enough for the default scoped VMEM limit with double buffering.
    target_bytes = 512 * 1024
    target_rows = max(sub, (target_bytes // (lane_w * itemsize)) // sub * sub)
    if rows <= target_rows:
        tile_rows = rows          # single block == full array dims (legal)
    else:
        tile_rows = target_rows   # multiple of the sublane packing (legal)
    grid = (pl.cdiv(rows, tile_rows),)

    kernel = functools.partial(
        _beta_mode_kernel,
        half_bin=float(bin_size) * 0.5,
        min_rating=float(min_rating),
        max_rating=float(max_rating),
    )

    block = pl.BlockSpec((tile_rows, lane_w), lambda i: (i, 0))

    out2d = pl.pallas_call(
        kernel,
        out_shape=jax.ShapeDtypeStruct((rows, lane_w), dtype),
        grid_spec=pltpu.PrefetchScalarGridSpec(
            num_scalar_prefetch=0,
            grid=grid,
            in_specs=[block, block],
            out_specs=pl.BlockSpec((tile_rows, lane_w), lambda i: (i, 0)),
        ),
        compiler_params=pltpu.CompilerParams(
            dimension_semantics=("parallel",),
        ),
        cost_estimate=pl.CostEstimate(
            flops=10 * n,
            transcendentals=0,
            bytes_accessed=3 * n * itemsize,
        ),
    )(a2d, b2d)

    out_flat = jnp.reshape(out2d, (-1,))
    if pad:
        out_flat = out_flat[:n]
    return jnp.reshape(out_flat, out_shape)


def _beta_mode_ref(inputs0, inputs1, *, bin_size=1.0, min_rating=1.0,
                   max_rating=5.0):
    """Plain-JAX reference mirroring the PyTorch module exactly."""
    a = inputs0[:, 0]
    b = inputs1[:, 0]
    a1 = a > 1.0
    b1 = b > 1.0
    dm = (a - 1.0) / (a + b - 2.0) * max_rating
    mode = jnp.where(
        a1 & b1, dm,
        jnp.where(a1 & ~b1, max_rating,
                  jnp.where(~a1 & b1, 0.0,
                            jnp.where(a > b, max_rating,
                                      jnp.where(a < b, 0.0,
                                                0.5 * max_rating)))))
    return jnp.clip(mode + bin_size / 2.0, min_rating, max_rating)


if __name__ == "__main__":
    key = jax.random.PRNGKey(0)
    k0, k1 = jax.random.split(key)

    # inputs[0], inputs[1]: (batch, channels) beta-distribution parameters.
    B, C = 256, 2
    inputs0 = jax.random.uniform(k0, (B, C), dtype=jnp.float32,
                                 minval=0.1, maxval=4.0)
    inputs1 = jax.random.uniform(k1, (B, C), dtype=jnp.float32,
                                 minval=0.1, maxval=4.0)
    # Force every branch: a>1&b>1, a>1&b<=1, a<=1&b>1, both<=1 with >,<,== .
    inputs0 = inputs0.at[0, 0].set(0.5).at[1, 0].set(0.5).at[2, 0].set(0.7)
    inputs1 = inputs1.at[0, 0].set(0.5).at[1, 0].set(0.9).at[2, 0].set(0.3)

    out = beta_mode(inputs0, inputs1)
    out = jax.block_until_ready(out)

    ref = _beta_mode_ref(inputs0, inputs1)
    assert out.shape == ref.shape and out.dtype == ref.dtype
    assert jnp.allclose(out, ref, atol=1e-6, rtol=1e-6)

    # Second, lane-unaligned batch to exercise the tail-padding path.
    B2 = 37
    j0 = jax.random.uniform(jax.random.PRNGKey(1), (B2, 3), dtype=jnp.float32,
                            minval=0.1, maxval=4.0)
    j1 = jax.random.uniform(jax.random.PRNGKey(2), (B2, 3), dtype=jnp.float32,
                            minval=0.1, maxval=4.0)
    out2 = jax.block_until_ready(beta_mode(j0, j1))
    ref2 = _beta_mode_ref(j0, j1)
    assert out2.shape == ref2.shape and out2.dtype == ref2.dtype
    assert jnp.allclose(out2, ref2, atol=1e-6, rtol=1e-6)

    print("KERNEL_OK")
</pallas_src>

<mosaic_0001>
module attributes {stable_mosaic.version = 11 : i64} {
  func.func @_beta_mode_kernel(%arg0: i32, %arg1: memref<1x256xf32, #tpu.memory_space<vmem>>, %arg2: memref<1x256xf32, #tpu.memory_space<vmem>>, %arg3: memref<1x256xf32, #tpu.memory_space<vmem>>) attributes {dimension_semantics = [#tpu.dimension_semantics<parallel>], iteration_bounds = array<i64: 1>, scalar_prefetch = 0 : i64, scratch_operands = 0 : i64, tpu.core_type = #tpu.core_type<tc>, window_params = [{transform_indices = @transform_0, window_bounds = array<i64: 1, 256>}, {transform_indices = @transform_1, window_bounds = array<i64: 1, 256>}, {transform_indices = @transform_2, window_bounds = array<i64: 1, 256>}]} {
    %c0 = arith.constant 0 : index
    %c0_0 = arith.constant 0 : index
    %0 = vector.load %arg1[%c0, %c0_0] : memref<1x256xf32, #tpu.memory_space<vmem>>, vector<1x256xf32>
    %c0_1 = arith.constant 0 : index
    %c0_2 = arith.constant 0 : index
    %1 = vector.load %arg2[%c0_1, %c0_2] : memref<1x256xf32, #tpu.memory_space<vmem>>, vector<1x256xf32>
    %cst = arith.constant 1.000000e+00 : f32
    %2 = vector.broadcast %cst : f32 to vector<1x256xf32>
    %3 = arith.subf %0, %2 : vector<1x256xf32>
    %4 = arith.addf %0, %1 : vector<1x256xf32>
    %cst_3 = arith.constant 2.000000e+00 : f32
    %5 = vector.broadcast %cst_3 : f32 to vector<1x256xf32>
    %6 = arith.subf %4, %5 : vector<1x256xf32>
    %7 = arith.divf %3, %6 : vector<1x256xf32>
    %cst_4 = arith.constant 5.000000e+00 : f32
    %8 = vector.broadcast %cst_4 : f32 to vector<1x256xf32>
    %9 = arith.mulf %7, %8 : vector<1x256xf32>
    %cst_5 = arith.constant 1.000000e+00 : f32
    %10 = vector.broadcast %cst_5 : f32 to vector<1x256xf32>
    %11 = arith.cmpf ogt, %0, %10 : vector<1x256xf32>
    %cst_6 = arith.constant 1.000000e+00 : f32
    %12 = vector.broadcast %cst_6 : f32 to vector<1x256xf32>
    %13 = arith.cmpf ogt, %1, %12 : vector<1x256xf32>
    %14 = arith.andi %11, %13 : vector<1x256xi1>
    %15 = arith.cmpf ogt, %0, %1 : vector<1x256xf32>
    %16 = arith.cmpf olt, %0, %1 : vector<1x256xf32>
    %cst_7 = arith.constant 0.000000e+00 : f32
    %cst_8 = arith.constant 2.500000e+00 : f32
    %17 = vector.broadcast %cst_7 : f32 to vector<1x256xf32>
    %18 = vector.broadcast %cst_8 : f32 to vector<1x256xf32>
    %19 = arith.select %16, %17, %18 : vector<1x256xi1>, vector<1x256xf32>
    %cst_9 = arith.constant 5.000000e+00 : f32
    %20 = vector.broadcast %cst_9 : f32 to vector<1x256xf32>
    %21 = arith.select %15, %20, %19 : vector<1x256xi1>, vector<1x256xf32>
    %22 = arith.select %14, %9, %21 : vector<1x256xi1>, vector<1x256xf32>
    %cst_10 = arith.constant 5.000000e-01 : f32
    %23 = vector.broadcast %cst_10 : f32 to vector<1x256xf32>
    %24 = arith.addf %22, %23 : vector<1x256xf32>
    %cst_11 = arith.constant 1.000000e+00 : f32
    %cst_12 = arith.constant 5.000000e+00 : f32
    %25 = vector.broadcast %cst_11 : f32 to vector<1x256xf32>
    %26 = arith.maximumf %25, %24 : vector<1x256xf32>
    %27 = vector.broadcast %cst_12 : f32 to vector<1x256xf32>
    %28 = arith.minimumf %27, %26 : vector<1x256xf32>
    %c0_13 = arith.constant 0 : index
    %c0_14 = arith.constant 0 : index
    %29 = vector.load %arg3[%c0_13, %c0_14] : memref<1x256xf32, #tpu.memory_space<vmem>>, vector<1x256xf32>
    tpu.vector_store %arg3[%c0_13, %c0_14], %28 {strides = array<i32>} : memref<1x256xf32, #tpu.memory_space<vmem>>, vector<1x256xf32>,
    return
  }
  func.func @transform_0(%arg0: i32) -> (i32, i32) {
    %c0_i32 = arith.constant 0 : i32
    %c0_i32_0 = arith.constant 0 : i32
    return %arg0, %c0_i32 : i32, i32
  }
  func.func @transform_1(%arg0: i32) -> (i32, i32) {
    %c0_i32 = arith.constant 0 : i32
    %c0_i32_0 = arith.constant 0 : i32
    return %arg0, %c0_i32 : i32, i32
  }
  func.func @transform_2(%arg0: i32) -> (i32, i32) {
    %c0_i32 = arith.constant 0 : i32
    %c0_i32_0 = arith.constant 0 : i32
    return %arg0, %c0_i32 : i32, i32
  }
}

</mosaic_0001>

<bundles_post_ra>
// kernel: tpu_custom_call.1
= control target key start
LH: loop header
LB: loop body
LE: loop exit
PB: predicated region body
PF: predicated region fallthrough
CT: control target
= control target key end

     0   :  { %7 = vsyncpa [#allocation3], 0  ;;  %s209_s0 = inlined_call_operand.hbm [shape: f32[1,256], index: 0, kind: input, shape index: {}]   ;;  %s210_s1 = inlined_call_operand.hbm [shape: f32[1,256], index: 1, kind: input, shape index: {}]   ;;  %s211_s2 = inlined_call_operand.hbm [shape: f32[1,256], index: 2, kind: output, shape index: {}]  }
   0x1   :  { %8 = vsyncpa [#allocation6], 0 }
   0x2   :  { %9 = vsyncpa [#allocation4], 0  ;;  %s15_s11 = sshll.u32 %s209_s0, 4  ;;  %s181_s12 = smov [#allocation2]   ;;  %s16_s11 = int_to_ptr.hbm [resolvable:$true] %s15_s11 }
   0x3   :  { %s17_s13 = sshll.u32 %s181_s12, 4  ;;  %s26_s16 = sshll.u32 %s210_s1, 4  ;;  %s18_s13 = int_to_ptr.vmem [resolvable:$true] %s17_s13  ;;  %s27_s16 = int_to_ptr.hbm [resolvable:$true] %s26_s16 }
   0x4   :  { %20 = dma.hbm_to_vmem [thread:$0]  %s16_s11, 32, %s18_s13, [#allocation3]  }
   0x5   :  { %s182_s17 = smov [#allocation5]  }
   0x6   :  { %s28_s18 = sshll.u32 %s182_s17, 4  ;;  %s29_s18 = int_to_ptr.vmem [resolvable:$true] %s28_s18 }
   0x7   :  { %31 = dma.hbm_to_vmem [thread:$0]  %s27_s16, 32, %s29_s18, [#allocation6]  }
   0x8   :  { %175 = dma.done.wait [#allocation3], 32  }
   0x9   :  { %176 = vsyncadd [#allocation3], 4294967264 }
   0xa   :  { %177 = dma.done.wait [#allocation6], 32  }
   0xb   :  { %178 = vsyncadd [#allocation6], 4294967264  ;;  %v40_v0 = vld [vmem:[#allocation2] sm:$0x3]  ;;  %v41_v1 = vld [vmem:[#allocation5] sm:$0x3]  ;;  %v72_v21 = vlaneseq }
   0xc   :  { %v43_v2 = vadd.f32 %v41_v1, %v40_v0  ;;  %vm65_vm3 = vcmp.lt.f32.partialorder %v40_v0, %v41_v1  ;;  %v95_v11 = vadd.f32 -1.0, %v40_v0  ;;  %vm61_vm5 = vcmp.gt.f32.partialorder %v40_v0, 1.0  ;;  %s184_s0 = smov [#allocation7]   ;;  %s84_s21 = sshll.u32 %s211_s2, 4  ;;  %s85_s21 = int_to_ptr.hbm [resolvable:$true] %s84_s21 }
   0xd   :  { %vm62_vm6 = vcmp.gt.f32.partialorder %v41_v1, 1.0  ;;  %vm64_vm7 = vcmp.gt.f32.partialorder %v40_v0, %v41_v1  ;;  %v183_v14 = vmov 2.5   ;;  %s82_s1 = sshll.u32 %s184_s0, 4  ;;  %vm74_vm9 = vcmp.lt.s32.totalorder %v72_v21, 256  ;;  %s83_s1 = int_to_ptr.vmem [resolvable:$true] %s82_s1 }
   0xe   :  { %v96_v3 = vadd.f32 -2.0, %v43_v2  ;;  %v66_v15 = vsel %vm65_vm3, 0.0, %v183_v14  ;;  %vm63_vm8 = vmand %vm61_vm5, %vm62_vm6 }
   0xf   :  { %v67_v18 = vsel %vm64_vm7, 5.0, %v66_v15 }
  0x10   :  { %101 = vrcp.f32 %v96_v3  ;;  %v56_v6 = vand.u32 2147483648, %v96_v3  ;;  %vm50_vm0 = vweird.f32 %v96_v3  ;;  %v54_v8 = vand.u32 2147483647, %v96_v3 }
  0x12   :  { %v57_v10 = vor.u32 1.1754944e-38, %v56_v6  ;;  %vm55_vm4 = vcmp.eq.f32.partialorder %v54_v8, 8.507059e+37 }
  0x16   :  { %v102_v4 = vpop.eup %101 }
  0x17   :  { %v46_v5 = vmul.f32 %v102_v4, %v96_v3  ;;  %vm51_vm1 = vweird.f32 %v102_v4 }
  0x18   :  { %vm52_vm2 = vmor %vm50_vm0, %vm51_vm1 }
  0x19   :  { %v47_v7 = vsub.f32 1.0, %v46_v5 }
  0x1b   :  { %v48_v9 = vmul.f32 %v102_v4, %v47_v7 }
  0x1d   :  { %v49_v12 = vadd.f32 %v102_v4, %v48_v9 }
  0x1f   :  { %v53_v13 = vsel %vm52_vm2, %v102_v4, %v49_v12 }
  0x20   :  { %v58_v16 = vsel %vm55_vm4, %v57_v10, %v53_v13 }
  0x21   :  { %v59_v17 = vmul.f32 %v95_v11, %v58_v16 }
  0x23   :  { %v60_v19 = vmul.f32 5.0, %v59_v17 }
  0x25   :  { %v68_v20 = vsel %vm63_vm8, %v60_v19, %v67_v18 }
  0x26   :  { %v69_v22 = vadd.f32 0.5, %v68_v20 }
  0x28   :  { %v70_v23 = vmax.f32 %v69_v22, 1.0 }
  0x2a   :  { %v71_v24 = vmin.f32 %v70_v23, 5.0 }
  0x2c   :  { %76 = vst.msk [vmem:[#allocation7] sm:$0x3] %vm74_vm9, %v71_v24 }
  0x2d   :  { %87 = dma.vmem_to_hbm [thread:$0]  %s83_s1, 32, %s85_s21, [#allocation4]  }
  0x2e   :  { %179 = dma.done.wait [#allocation4], 32  }
  0x2f   :  { %180 = vsyncadd [#allocation4], 4294967264 }
  0x30   :  { %92 = vsyncpa [#allocation3], 1 }
  0x31   :  { %93 = vsyncpa [#allocation6], 1 }
  0x32   :  { %94 = vsyncpa [#allocation4], 1 }

</bundles_post_ra>
